<compile_context>
chip_gen: v7x
topology: tpu7x:2x2x1
jax: 0.10.0
libtpu: 0.0.40
codegen_flags: <defaults>
</compile_context>

<pallas_src>
import math
import functools

import jax
import jax.numpy as jnp
from jax import lax
from jax.experimental import pallas as pl
from jax.experimental.pallas import tpu as pltpu


_LN_EPS = 1e-5                     # torch.nn.LayerNorm default


@functools.lru_cache(maxsize=None)
def _vmem_limit_bytes():
    """Generation-dependent scoped-VMEM limit (v7x: 64 MiB physical; v5e/v6e: 128 MiB)."""
    default = 48 * 1024 * 1024
    try:
        cap = getattr(pltpu.get_tpu_info(), "vmem_capacity_bytes", None)
    except Exception:
        return default
    if not cap:
        return default
    return int(min(cap * 3 // 4, 100 * 1024 * 1024))


def _layernorm_f32(h, gamma, beta):
    mu = jnp.mean(h, axis=-1, keepdims=True)
    var = jnp.mean((h - mu) ** 2, axis=-1, keepdims=True)
    return (h - mu) * lax.rsqrt(var + _LN_EPS) * gamma + beta


# ---------------------------------------------------------------------------
# Kernel A: fused LayerNorm1 + QKV projection (row-wise over B*T)
# ---------------------------------------------------------------------------
def _ln_qkv_kernel(x_ref, g_ref, b_ref, w_ref, bias_ref, qkv_ref):
    x = x_ref[...].astype(jnp.float32)                      # (TR, C)
    h = _layernorm_f32(x, g_ref[...], b_ref[...])           # f32 statistics
    qkv = jnp.dot(h.astype(jnp.bfloat16), w_ref[...],       # bf16 MXU operands
                  preferred_element_type=jnp.float32) + bias_ref[...]
    qkv_ref[...] = qkv.astype(qkv_ref.dtype)                 # stored bf16


# ---------------------------------------------------------------------------
# Kernel B: flash-style causal attention.
#   grid = (B, H, T//TQ, T//TK); KV axis last, "arbitrary".
#   q/k/v in (B, H, T, hd) layout; per-step tiles are 2-D (TQ,hd)/(TK,hd).
# ---------------------------------------------------------------------------
def _flash_attn_kernel(q_ref, k_ref, v_ref, o_ref, m_ref, l_ref, acc_ref):
    TQ = q_ref.shape[2]
    TK = k_ref.shape[2]
    hd = q_ref.shape[3]
    qi = pl.program_id(2)
    ki = pl.program_id(3)

    @pl.when(ki == 0)
    def _init():
        m_ref[...] = jnp.full(m_ref.shape, -1e30, jnp.float32)
        l_ref[...] = jnp.zeros(l_ref.shape, jnp.float32)
        acc_ref[...] = jnp.zeros(acc_ref.shape, jnp.float32)

    # Causal tile skip: this k tile contributes iff its first column is <= the
    # last row of the q tile.  Skipped tiles do no MXU / exp work.
    @pl.when(ki * TK < (qi + 1) * TQ)
    def _compute():
        scale = 1.0 / math.sqrt(hd)
        # pre-scale q on the tiny (TQ, hd) tile instead of the (TQ, TK) scores
        q = (q_ref[0, 0].astype(jnp.float32) * scale).astype(jnp.bfloat16)
        k = k_ref[0, 0]                                       # (TK, hd) bf16
        v = v_ref[0, 0]                                       # (TK, hd) bf16

        s = jnp.einsum('qd,kd->qk', q, k,
                       preferred_element_type=jnp.float32)    # (TQ, TK) f32

        # causal mask (cheap VPU work relative to the matmuls; fully-causal
        # tiles it is a no-op select)
        row = qi * TQ + lax.broadcasted_iota(jnp.int32, (TQ, TK), 0)
        col = ki * TK + lax.broadcasted_iota(jnp.int32, (TQ, TK), 1)
        s = jnp.where(col <= row, s, -1e30)

        # online softmax update
        m_prev = m_ref[...]                                   # (TQ, 1)
        m_new = jnp.maximum(m_prev, jnp.max(s, axis=-1, keepdims=True))
        alpha = jnp.exp(m_prev - m_new)
        p = jnp.exp(s - m_new)                                # unnormalized
        l_ref[...] = alpha * l_ref[...] + jnp.sum(p, axis=-1, keepdims=True)
        acc_ref[...] = alpha * acc_ref[...] + jnp.einsum(
            'qk,kd->qd', p.astype(jnp.bfloat16), v,
            preferred_element_type=jnp.float32)               # (TQ, hd)
        m_ref[...] = m_new

    # finalize on the last k tile that is actually processed for this q tile
    @pl.when(ki == ((qi + 1) * TQ - 1) // TK)
    def _finalize():
        o_ref[0, 0] = (acc_ref[...] *
                       pl.reciprocal(l_ref[...], approx=True)).astype(o_ref.dtype)


# ---------------------------------------------------------------------------
# Kernel C: attention output projection + residual 1 + LN2 + MLP + residual 2
#   (row-wise over B*T)
# ---------------------------------------------------------------------------
def _proj_mlp_kernel(x_ref, y_ref, w_proj_ref, b_proj_ref,
                     ln2_g_ref, ln2_b_ref,
                     w_fc_ref, b_fc_ref, w_fc2_ref, b_fc2_ref, o_ref):
    x = x_ref[...].astype(jnp.float32)                       # (TR, C)
    proj = jnp.dot(y_ref[...], w_proj_ref[...],              # bf16 operands
                   preferred_element_type=jnp.float32) + b_proj_ref[...]
    x1 = x + proj                                            # residual 1 (f32)

    h = _layernorm_f32(x1, ln2_g_ref[...], ln2_b_ref[...])
    f = jnp.dot(h.astype(jnp.bfloat16), w_fc_ref[...],
                preferred_element_type=jnp.float32) + b_fc_ref[...]   # (TR, 4C)
    # exact GELU (torch.nn.GELU default, approximate='none'), f32 on the VPU
    g = 0.5 * f * (1.0 + lax.erf(f * (1.0 / math.sqrt(2.0))))
    m = jnp.dot(g.astype(jnp.bfloat16), w_fc2_ref[...],
                preferred_element_type=jnp.float32) + b_fc2_ref[...]  # (TR, C)
    o_ref[...] = (x1 + m).astype(o_ref.dtype)                 # residual 2


# ---------------------------------------------------------------------------
# Wrapper
# ---------------------------------------------------------------------------
def _pick_tile(total, target):
    """Largest divisor of `total` that is <= target and a multiple of 8
    (or the full extent, which BlockSpec always accepts).
    NOTE: for prime/odd `total` this returns the full extent — callers should
    keep shapes 8/128 friendly."""
    for t in range(min(target, total), 0, -1):
        if total % t == 0 and (t % 8 == 0 or t == total):
            return t
    return total


def _rep_spec(shape, single_buffer):
    """Whole (small) parameter resident in VMEM; same block at every grid step.
    With single_buffer=True the constant block is single-buffered
    (pipeline_mode=pl.Buffered(1)), halving its VMEM footprint."""
    nd = len(shape)
    idx = lambda *_: (0,) * nd
    if single_buffer:
        return pl.BlockSpec(shape, idx, pipeline_mode=pl.Buffered(buffer_count=1))
    return pl.BlockSpec(shape, idx)


def transformer_block(x, params, n_head, *, single_buffer_weights=True):
    """Pallas TPU forward pass of the GPT `Block`.  x: (B, T, C) float32."""
    B, T, C = x.shape
    assert C % n_head == 0
    N = B * T
    hd = C // n_head
    bf16 = jnp.bfloat16
    vmem_limit = _vmem_limit_bytes()

    # MXU operands in bf16 (f32 accumulation); biases / LN params stay f32.
    w_attn = params["w_attn"].astype(bf16)
    w_proj = params["w_proj"].astype(bf16)
    w_fc = params["w_fc"].astype(bf16)
    w_fc2 = params["w_fc2"].astype(bf16)

    TR = _pick_tile(N, 256)       # row tile for the row-wise kernels
    TQ = _pick_tile(T, 256)       # q-row tile for attention
    TK = _pick_tile(T, 256)       # kv tile for attention

    def rep(shape):
        return _rep_spec(shape, single_buffer_weights)

    x2d = x.reshape(N, C)

    # ---- Kernel A: LN1 + QKV projection ------------------------------------
    qkv2d = pl.pallas_call(
        _ln_qkv_kernel,
        out_shape=jax.ShapeDtypeStruct((N, 3 * C), bf16),
        grid=(N // TR,),
        in_specs=[
            pl.BlockSpec((TR, C), lambda i: (i, 0)),
            rep((1, C)), rep((1, C)),
            rep((C, 3 * C)), rep((1, 3 * C)),
        ],
        out_specs=pl.BlockSpec((TR, 3 * C), lambda i: (i, 0)),
        compiler_params=pltpu.CompilerParams(
            dimension_semantics=("parallel",),
            vmem_limit_bytes=vmem_limit),
        cost_estimate=pl.CostEstimate(
            flops=int(2 * N * C * 3 * C),
            transcendentals=int(N),
            bytes_accessed=int(N * C * 4 + C * 3 * C * 2 + N * 3 * C * 2)),
    )(x2d, params["ln1_g"], params["ln1_b"], w_attn, params["b_attn"])

    # Head split / (B, H, T, hd) layout (matches PyTorch split + view + transpose(1,2)).
    # TODO(synk): fold this layout pass into kernel A/B (lane-alignment limits).
    qkv = qkv2d.reshape(B, T, 3, n_head, hd)
    q = jnp.transpose(qkv[:, :, 0], (0, 2, 1, 3))   # (B, H, T, hd) bf16
    k = jnp.transpose(qkv[:, :, 1], (0, 2, 1, 3))
    v = jnp.transpose(qkv[:, :, 2], (0, 2, 1, 3))

    # ---- Kernel B: flash-style causal attention ------------------------------
    y = pl.pallas_call(
        _flash_attn_kernel,
        out_shape=jax.ShapeDtypeStruct((B, n_head, T, hd), bf16),
        grid=(B, n_head, T // TQ, T // TK),
        in_specs=[
            pl.BlockSpec((1, 1, TQ, hd), lambda b, h, qi, ki: (b, h, qi, 0)),
            pl.BlockSpec((1, 1, TK, hd), lambda b, h, qi, ki: (b, h, ki, 0)),
            pl.BlockSpec((1, 1, TK, hd), lambda b, h, qi, ki: (b, h, ki, 0)),
        ],
        out_specs=pl.BlockSpec((1, 1, TQ, hd), lambda b, h, qi, ki: (b, h, qi, 0)),
        scratch_shapes=[
            pltpu.VMEM((TQ, 1), jnp.float32),    # running max m
            pltpu.VMEM((TQ, 1), jnp.float32),    # running denom l
            pltpu.VMEM((TQ, hd), jnp.float32),   # output accumulator
        ],
        compiler_params=pltpu.CompilerParams(
            dimension_semantics=("parallel", "parallel", "parallel", "arbitrary"),
            vmem_limit_bytes=vmem_limit),
        cost_estimate=pl.CostEstimate(
            flops=int(2 * B * T * T * C),                   # ~causal half
            transcendentals=int(B * n_head * T * T // 2),
            bytes_accessed=int(3 * B * T * C * 2 + B * T * C * 2)),
    )(q, k, v)

    # head merge (matches PyTorch transpose(1,2).contiguous().view(B,T,C))
    y2d = jnp.transpose(y, (0, 2, 1, 3)).reshape(N, C)       # bf16

    # ---- Kernel C: proj + residual1 + LN2 + MLP + residual2 -----------------
    out2d = pl.pallas_call(
        _proj_mlp_kernel,
        out_shape=jax.ShapeDtypeStruct((N, C), x.dtype),
        grid=(N // TR,),
        in_specs=[
            pl.BlockSpec((TR, C), lambda i: (i, 0)),          # x (residual 1)
            pl.BlockSpec((TR, C), lambda i: (i, 0)),          # attention y
            rep((C, C)), rep((1, C)),                         # c_proj
            rep((1, C)), rep((1, C)),                         # ln2
            rep((C, 4 * C)), rep((1, 4 * C)),                 # c_fc
            rep((4 * C, C)), rep((1, C)),                     # mlp c_proj
        ],
        out_specs=pl.BlockSpec((TR, C), lambda i: (i, 0)),
        compiler_params=pltpu.CompilerParams(
            dimension_semantics=("parallel",),
            vmem_limit_bytes=vmem_limit),
        cost_estimate=pl.CostEstimate(
            flops=int(18 * N * C * C),
            transcendentals=int(N * 4 * C),
            bytes_accessed=int(N * C * (4 + 2 + 4) + 9 * C * C * 2)),
    )(x2d, y2d, w_proj, params["b_proj"],
      params["ln2_g"], params["ln2_b"],
      w_fc, params["b_fc"], w_fc2, params["b_fc2"])

    return out2d.reshape(B, T, C)


# ---------------------------------------------------------------------------
# Parameters & pure-JAX reference (numerical self-check)
# ---------------------------------------------------------------------------
def init_params(key, n_embd):
    """Deterministic synthetic parameters (shapes follow the PyTorch module)."""
    C = n_embd
    ks = jax.random.split(key, 8)
    s = 0.02
    return {
        "ln1_g": jnp.ones((1, C), jnp.float32),
        "ln1_b": jnp.zeros((1, C), jnp.float32),
        "w_attn": s * jax.random.normal(ks[0], (C, 3 * C), jnp.float32),
        "b_attn": s * jax.random.normal(ks[1], (1, 3 * C), jnp.float32),
        "w_proj": s * jax.random.normal(ks[2], (C, C), jnp.float32),
        "b_proj": s * jax.random.normal(ks[3], (1, C), jnp.float32),
        "ln2_g": jnp.ones((1, C), jnp.float32),
        "ln2_b": jnp.zeros((1, C), jnp.float32),
        "w_fc": s * jax.random.normal(ks[4], (C, 4 * C), jnp.float32),
        "b_fc": s * jax.random.normal(ks[5], (1, 4 * C), jnp.float32),
        "w_fc2": s * jax.random.normal(ks[6], (4 * C, C), jnp.float32),
        "b_fc2": s * jax.random.normal(ks[7], (1, C), jnp.float32),
    }


def block_reference(x, params, n_head):
    """Pure-JAX f32 reference of the PyTorch Block forward (dropout=0)."""
    B, T, C = x.shape
    hd = C // n_head

    def ln(h, g, b):
        mu = h.mean(-1, keepdims=True)
        var = ((h - mu) ** 2).mean(-1, keepdims=True)
        return (h - mu) / jnp.sqrt(var + _LN_EPS) * g + b

    h = ln(x, params["ln1_g"], params["ln1_b"])
    qkv = h @ params["w_attn"] + params["b_attn"]
    q, k, v = jnp.split(qkv, 3, axis=-1)
    q = q.reshape(B, T, n_head, hd).transpose(0, 2, 1, 3)
    k = k.reshape(B, T, n_head, hd).transpose(0, 2, 1, 3)
    v = v.reshape(B, T, n_head, hd).transpose(0, 2, 1, 3)
    att = (q @ jnp.swapaxes(k, -1, -2)) * (1.0 / math.sqrt(hd))
    mask = jnp.tril(jnp.ones((T, T), bool))
    att = jnp.where(mask, att, -jnp.inf)
    att = jax.nn.softmax(att, axis=-1)
    y = (att @ v).transpose(0, 2, 1, 3).reshape(B, T, C)
    x1 = x + y @ params["w_proj"] + params["b_proj"]
    h2 = ln(x1, params["ln2_g"], params["ln2_b"])
    f = h2 @ params["w_fc"] + params["b_fc"]
    g = 0.5 * f * (1.0 + lax.erf(f * (1.0 / math.sqrt(2.0))))
    return x1 + g @ params["w_fc2"] + params["b_fc2"]


if __name__ == "__main__":
    # small config consistent with the module (block_size >= T)
    B, T, C, n_head = 2, 16, 64, 4

    key = jax.random.PRNGKey(0)
    kx, kp = jax.random.split(key)
    x = jax.random.normal(kx, (B, T, C), jnp.float32)
    params = init_params(kp, C)
    ref = block_reference(x, params, n_head)

    def run_and_check(single_buffer):
        out = transformer_block(x, params, n_head,
                                single_buffer_weights=single_buffer)
        jax.block_until_ready(out)
        err = float(jnp.max(jnp.abs(out - ref)))
        return out, err

    # Prefer single-buffered resident weights; fall back to default buffering
    # if pipeline_mode=pl.Buffered(1) is unsupported in this JAX build.
    out, err, ok = None, None, False
    try:
        out, err = run_and_check(True)
        ok = err < 2e-2
    except Exception:
        ok = False
    if not ok:
        out, err = run_and_check(False)
        assert err < 2e-2, f"max abs err {err}"

    assert out.shape == (B, T, C)
    print("KERNEL_OK")
</pallas_src>

<mosaic_0001>
module attributes {stable_mosaic.version = 11 : i64} {
  func.func @_ln_qkv_kernel(%arg0: i32, %arg1: memref<32x64xf32, #tpu.memory_space<vmem>>, %arg2: memref<1x64xf32, #tpu.memory_space<vmem>>, %arg3: memref<1x64xf32, #tpu.memory_space<vmem>>, %arg4: memref<64x192xbf16, #tpu.memory_space<vmem>>, %arg5: memref<1x192xf32, #tpu.memory_space<vmem>>, %arg6: memref<32x192xbf16, #tpu.memory_space<vmem>>) attributes {dimension_semantics = [#tpu.dimension_semantics<parallel>], iteration_bounds = array<i64: 1>, scalar_prefetch = 0 : i64, scratch_operands = 0 : i64, tpu.core_type = #tpu.core_type<tc>, window_params = [{transform_indices = @transform_0, window_bounds = array<i64: 32, 64>}, {pipeline_mode = #tpu.pipeline_mode<synchronous>, transform_indices = @transform_1, window_bounds = array<i64: 1, 64>}, {pipeline_mode = #tpu.pipeline_mode<synchronous>, transform_indices = @transform_2, window_bounds = array<i64: 1, 64>}, {pipeline_mode = #tpu.pipeline_mode<synchronous>, transform_indices = @transform_3, window_bounds = array<i64: 64, 192>}, {pipeline_mode = #tpu.pipeline_mode<synchronous>, transform_indices = @transform_4, window_bounds = array<i64: 1, 192>}, {transform_indices = @transform_5, window_bounds = array<i64: 32, 192>}]} {
    %c0 = arith.constant 0 : index
    %c0_0 = arith.constant 0 : index
    %0 = vector.load %arg1[%c0, %c0_0] : memref<32x64xf32, #tpu.memory_space<vmem>>, vector<32x64xf32>
    %c0_1 = arith.constant 0 : index
    %c0_2 = arith.constant 0 : index
    %1 = vector.load %arg2[%c0_1, %c0_2] : memref<1x64xf32, #tpu.memory_space<vmem>>, vector<1x64xf32>
    %c0_3 = arith.constant 0 : index
    %c0_4 = arith.constant 0 : index
    %2 = vector.load %arg3[%c0_3, %c0_4] : memref<1x64xf32, #tpu.memory_space<vmem>>, vector<1x64xf32>
    %cst = arith.constant dense<0.000000e+00> : vector<32xf32>
    %3 = vector.multi_reduction <add>, %0, %cst [1] : vector<32x64xf32> to vector<32xf32>
    %4 = vector.shape_cast %3 : vector<32xf32> to vector<32x1xf32>
    %cst_5 = arith.constant 6.400000e+01 : f32
    %5 = vector.broadcast %cst_5 : f32 to vector<32x1xf32>
    %6 = arith.divf %4, %5 : vector<32x1xf32>
    %7 = vector.broadcast %6 : vector<32x1xf32> to vector<32x64xf32>
    %8 = arith.subf %0, %7 : vector<32x64xf32>
    %9 = arith.mulf %8, %8 : vector<32x64xf32>
    %cst_6 = arith.constant dense<0.000000e+00> : vector<32xf32>
    %10 = vector.multi_reduction <add>, %9, %cst_6 [1] : vector<32x64xf32> to vector<32xf32>
    %11 = vector.shape_cast %10 : vector<32xf32> to vector<32x1xf32>
    %cst_7 = arith.constant 6.400000e+01 : f32
    %12 = vector.broadcast %cst_7 : f32 to vector<32x1xf32>
    %13 = arith.divf %11, %12 : vector<32x1xf32>
    %14 = vector.broadcast %6 : vector<32x1xf32> to vector<32x64xf32>
    %15 = arith.subf %0, %14 : vector<32x64xf32>
    %cst_8 = arith.constant 9.99999974E-6 : f32
    %16 = vector.broadcast %cst_8 : f32 to vector<32x1xf32>
    %17 = arith.addf %13, %16 : vector<32x1xf32>
    %18 = math.rsqrt %17 : vector<32x1xf32>
    %19 = vector.broadcast %18 : vector<32x1xf32> to vector<32x64xf32>
    %20 = arith.mulf %15, %19 : vector<32x64xf32>
    %21 = vector.broadcast %1 : vector<1x64xf32> to vector<32x64xf32>
    %22 = arith.mulf %20, %21 : vector<32x64xf32>
    %23 = vector.broadcast %2 : vector<1x64xf32> to vector<32x64xf32>
    %24 = arith.addf %22, %23 : vector<32x64xf32>
    %25 = arith.truncf %24 : vector<32x64xf32> to vector<32x64xbf16>
    %c0_9 = arith.constant 0 : index
    %c0_10 = arith.constant 0 : index
    %26 = vector.load %arg4[%c0_9, %c0_10] : memref<64x192xbf16, #tpu.memory_space<vmem>>, vector<64x192xbf16>
    %cst_11 = arith.constant dense<0.000000e+00> : vector<32x192xf32>
    %27 = tpu.matmul %25, %26, %cst_11 {dimension_numbers = #tpu.dot_dimension_numbers<[1], [0], [0], [1], [0, 0, 1, 1], [], []>} : vector<32x64xbf16>, vector<64x192xbf16>, vector<32x192xf32> -> vector<32x192xf32>
    %c0_12 = arith.constant 0 : index
    %c0_13 = arith.constant 0 : index
    %28 = vector.load %arg5[%c0_12, %c0_13] : memref<1x192xf32, #tpu.memory_space<vmem>>, vector<1x192xf32>
    %29 = vector.broadcast %28 : vector<1x192xf32> to vector<32x192xf32>
    %30 = arith.addf %27, %29 : vector<32x192xf32>
    %31 = arith.truncf %30 : vector<32x192xf32> to vector<32x192xbf16>
    %c0_14 = arith.constant 0 : index
    %c0_15 = arith.constant 0 : index
    %32 = vector.load %arg6[%c0_14, %c0_15] : memref<32x192xbf16, #tpu.memory_space<vmem>>, vector<32x192xbf16>
    tpu.vector_store %arg6[%c0_14, %c0_15], %31 {strides = array<i32>} : memref<32x192xbf16, #tpu.memory_space<vmem>>, vector<32x192xbf16>,
    return
  }
  func.func @transform_0(%arg0: i32) -> (i32, i32) {
    %c0_i32 = arith.constant 0 : i32
    %c0_i32_0 = arith.constant 0 : i32
    return %arg0, %c0_i32 : i32, i32
  }
  func.func @transform_1(%arg0: i32) -> (i32, i32) {
    %c0_i32 = arith.constant 0 : i32
    %c0_i32_0 = arith.constant 0 : i32
    %c0_i32_1 = arith.constant 0 : i32
    return %c0_i32, %c0_i32_0 : i32, i32
  }
  func.func @transform_2(%arg0: i32) -> (i32, i32) {
    %c0_i32 = arith.constant 0 : i32
    %c0_i32_0 = arith.constant 0 : i32
    %c0_i32_1 = arith.constant 0 : i32
    return %c0_i32, %c0_i32_0 : i32, i32
  }
  func.func @transform_3(%arg0: i32) -> (i32, i32) {
    %c0_i32 = arith.constant 0 : i32
    %c0_i32_0 = arith.constant 0 : i32
    %c0_i32_1 = arith.constant 0 : i32
    return %c0_i32, %c0_i32_0 : i32, i32
  }
  func.func @transform_4(%arg0: i32) -> (i32, i32) {
    %c0_i32 = arith.constant 0 : i32
    %c0_i32_0 = arith.constant 0 : i32
    %c0_i32_1 = arith.constant 0 : i32
    return %c0_i32, %c0_i32_0 : i32, i32
  }
  func.func @transform_5(%arg0: i32) -> (i32, i32) {
    %c0_i32 = arith.constant 0 : i32
    %c0_i32_0 = arith.constant 0 : i32
    return %arg0, %c0_i32 : i32, i32
  }
}

module attributes {stable_mosaic.version = 11 : i64} {
  func.func @_ln_qkv_kernel(%arg0: i32, %arg1: memref<32x64xf32, #tpu.memory_space<vmem>>, %arg2: memref<1x64xf32, #tpu.memory_space<vmem>>, %arg3: memref<1x64xf32, #tpu.memory_space<vmem>>, %arg4: memref<64x192xbf16, #tpu.memory_space<vmem>>, %arg5: memref<1x192xf32, #tpu.memory_space<vmem>>, %arg6: memref<32x192xbf16, #tpu.memory_space<vmem>>) attributes {dimension_semantics = [#tpu.dimension_semantics<parallel>], iteration_bounds = array<i64: 1>, scalar_prefetch = 0 : i64, scratch_operands = 0 : i64, tpu.core_type = #tpu.core_type<tc>, window_params = [{transform_indices = @transform_0, window_bounds = array<i64: 32, 64>}, {pipeline_mode = #tpu.pipeline_mode<synchronous>, transform_indices = @transform_1, window_bounds = array<i64: 1, 64>}, {pipeline_mode = #tpu.pipeline_mode<synchronous>, transform_indices = @transform_2, window_bounds = array<i64: 1, 64>}, {pipeline_mode = #tpu.pipeline_mode<synchronous>, transform_indices = @transform_3, window_bounds = array<i64: 64, 192>}, {pipeline_mode = #tpu.pipeline_mode<synchronous>, transform_indices = @transform_4, window_bounds = array<i64: 1, 192>}, {transform_indices = @transform_5, window_bounds = array<i64: 32, 192>}]} {
    %c0 = arith.constant 0 : index
    %c0_0 = arith.constant 0 : index
    %0 = vector.load %arg1[%c0, %c0_0] : memref<32x64xf32, #tpu.memory_space<vmem>>, vector<32x64xf32>
    %c0_1 = arith.constant 0 : index
    %c0_2 = arith.constant 0 : index
    %1 = vector.load %arg2[%c0_1, %c0_2] : memref<1x64xf32, #tpu.memory_space<vmem>>, vector<1x64xf32>
    %c0_3 = arith.constant 0 : index
    %c0_4 = arith.constant 0 : index
    %2 = vector.load %arg3[%c0_3, %c0_4] : memref<1x64xf32, #tpu.memory_space<vmem>>, vector<1x64xf32>
    %cst = arith.constant dense<0.000000e+00> : vector<32xf32>
    %3 = vector.multi_reduction <add>, %0, %cst [1] : vector<32x64xf32> to vector<32xf32>
    %4 = vector.shape_cast %3 : vector<32xf32> to vector<32x1xf32>
    %cst_5 = arith.constant 6.400000e+01 : f32
    %5 = vector.broadcast %cst_5 : f32 to vector<32x1xf32>
    %6 = arith.divf %4, %5 : vector<32x1xf32>
    %7 = vector.broadcast %6 : vector<32x1xf32> to vector<32x64xf32>
    %8 = arith.subf %0, %7 : vector<32x64xf32>
    %9 = arith.mulf %8, %8 : vector<32x64xf32>
    %cst_6 = arith.constant dense<0.000000e+00> : vector<32xf32>
    %10 = vector.multi_reduction <add>, %9, %cst_6 [1] : vector<32x64xf32> to vector<32xf32>
    %11 = vector.shape_cast %10 : vector<32xf32> to vector<32x1xf32>
    %cst_7 = arith.constant 6.400000e+01 : f32
    %12 = vector.broadcast %cst_7 : f32 to vector<32x1xf32>
    %13 = arith.divf %11, %12 : vector<32x1xf32>
    %14 = vector.broadcast %6 : vector<32x1xf32> to vector<32x64xf32>
    %15 = arith.subf %0, %14 : vector<32x64xf32>
    %cst_8 = arith.constant 9.99999974E-6 : f32
    %16 = vector.broadcast %cst_8 : f32 to vector<32x1xf32>
    %17 = arith.addf %13, %16 : vector<32x1xf32>
    %18 = math.rsqrt %17 : vector<32x1xf32>
    %19 = vector.broadcast %18 : vector<32x1xf32> to vector<32x64xf32>
    %20 = arith.mulf %15, %19 : vector<32x64xf32>
    %21 = vector.broadcast %1 : vector<1x64xf32> to vector<32x64xf32>
    %22 = arith.mulf %20, %21 : vector<32x64xf32>
    %23 = vector.broadcast %2 : vector<1x64xf32> to vector<32x64xf32>
    %24 = arith.addf %22, %23 : vector<32x64xf32>
    %25 = arith.truncf %24 : vector<32x64xf32> to vector<32x64xbf16>
    %c0_9 = arith.constant 0 : index
    %c0_10 = arith.constant 0 : index
    %26 = vector.load %arg4[%c0_9, %c0_10] : memref<64x192xbf16, #tpu.memory_space<vmem>>, vector<64x192xbf16>
    %cst_11 = arith.constant dense<0.000000e+00> : vector<32x192xf32>
    %27 = tpu.matmul %25, %26, %cst_11 {dimension_numbers = #tpu.dot_dimension_numbers<[1], [0], [0], [1], [0, 0, 1, 1], [], []>} : vector<32x64xbf16>, vector<64x192xbf16>, vector<32x192xf32> -> vector<32x192xf32>
    %c0_12 = arith.constant 0 : index
    %c0_13 = arith.constant 0 : index
    %28 = vector.load %arg5[%c0_12, %c0_13] : memref<1x192xf32, #tpu.memory_space<vmem>>, vector<1x192xf32>
    %29 = vector.broadcast %28 : vector<1x192xf32> to vector<32x192xf32>
    %30 = arith.addf %27, %29 : vector<32x192xf32>
    %31 = arith.truncf %30 : vector<32x192xf32> to vector<32x192xbf16>
    %c0_14 = arith.constant 0 : index
    %c0_15 = arith.constant 0 : index
    %32 = vector.load %arg6[%c0_14, %c0_15] : memref<32x192xbf16, #tpu.memory_space<vmem>>, vector<32x192xbf16>
    tpu.vector_store %arg6[%c0_14, %c0_15], %31 {strides = array<i32>} : memref<32x192xbf16, #tpu.memory_space<vmem>>, vector<32x192xbf16>,
    return
  }
  func.func @transform_0(%arg0: i32) -> (i32, i32) {
    %c0_i32 = arith.constant 0 : i32
    %c0_i32_0 = arith.constant 0 : i32
    return %arg0, %c0_i32 : i32, i32
  }
  func.func @transform_1(%arg0: i32) -> (i32, i32) {
    %c0_i32 = arith.constant 0 : i32
    %c0_i32_0 = arith.constant 0 : i32
    %c0_i32_1 = arith.constant 0 : i32
    return %c0_i32, %c0_i32_0 : i32, i32
  }
  func.func @transform_2(%arg0: i32) -> (i32, i32) {
    %c0_i32 = arith.constant 0 : i32
    %c0_i32_0 = arith.constant 0 : i32
    %c0_i32_1 = arith.constant 0 : i32
    return %c0_i32, %c0_i32_0 : i32, i32
  }
  func.func @transform_3(%arg0: i32) -> (i32, i32) {
    %c0_i32 = arith.constant 0 : i32
    %c0_i32_0 = arith.constant 0 : i32
    %c0_i32_1 = arith.constant 0 : i32
    return %c0_i32, %c0_i32_0 : i32, i32
  }
  func.func @transform_4(%arg0: i32) -> (i32, i32) {
    %c0_i32 = arith.constant 0 : i32
    %c0_i32_0 = arith.constant 0 : i32
    %c0_i32_1 = arith.constant 0 : i32
    return %c0_i32, %c0_i32_0 : i32, i32
  }
  func.func @transform_5(%arg0: i32) -> (i32, i32) {
    %c0_i32 = arith.constant 0 : i32
    %c0_i32_0 = arith.constant 0 : i32
    return %arg0, %c0_i32 : i32, i32
  }
}

</mosaic_0001>

<bundles_post_ra>
// kernel: tpu_custom_call.1
= control target key start
LH: loop header
LB: loop body
LE: loop exit
PB: predicated region body
PF: predicated region fallthrough
CT: control target
= control target key end

     0   :  { %10 = vsyncpa [#allocation3], 0  ;;  %s553_s0 = inlined_call_operand.hbm [shape: f32[32,64], index: 0, kind: input, shape index: {}]   ;;  %s554_s1 = inlined_call_operand.vmem [shape: f32[1,64], index: 1, kind: input, shape index: {}]   ;;  %s555_s2 = inlined_call_operand.vmem [shape: f32[1,64], index: 2, kind: input, shape index: {}]   ;;  %s556_s3 = inlined_call_operand.hbm [shape: bf16[64,192], index: 3, kind: input, shape index: {}]   ;;  %s557_s4 = inlined_call_operand.vmem [shape: f32[1,192], index: 4, kind: input, shape index: {}]   ;;  %s558_s5 = inlined_call_operand.hbm [shape: bf16[32,192], index: 5, kind: output, shape index: {}]  }
   0x1   :  { %11 = vsyncpa [#allocation6], 0 }
   0x2   :  { %12 = vsyncpa [#allocation4], 0  ;;  %s426_s18 = smov [#allocation2]   ;;  %s354_s22 = scalar_lea.hbm %s553_s0, 512 }
   0x3   :  { %s18_s19 = sshll.u32 %s426_s18, 4  ;;  %p355_p0 = scmp.ne.s32.totalorder %s553_s0, %s354_s22  ;;  %s19_s19 = int_to_ptr.vmem [resolvable:$true] %s18_s19 }
   0x4   :  { %p358_p1 = scmp.lt.u32.totalorder %s354_s22, %s553_s0 }
   0x6   :  { %p360_p2 = pnand %p358_p1, %p355_p0 }
   0x8   :  { %363 = shalt.err (!%p360_p2)
}
   0x9   :  { %s364_s27 = scalar_lea.vmem %s19_s19, 512  ;;  %p369_p4 = scmp.lt.s32.totalorder %s19_s19, %s19_s19 }
   0xa   :  { %p365_p3 = scmp.ne.s32.totalorder %s19_s19, %s364_s27  ;;  %p370_p5 = scmp.lt.s32.totalorder %s364_s27, %s364_s27 }
   0xc   :  { %p371_p6 = por %p370_p5, %p369_p4 }
   0xe   :  { %p372_p7 = pnand %p371_p6, %p365_p3 }
  0x10   :  { %375 = shalt.err (!%p372_p7)
}
  0x11   :  { %s427_s28 = smov 128   ;;  %s428_s29 = smov 8  }
  0x12   :  { %24 = dma.hbm_to_vmem [thread:$0]  %s553_s0, 512, %s19_s19, [#allocation3], %s427_s28, %s427_s28, %s428_s29  }
  0x13   :  { %s429_s7 = smov [#allocation5]   ;;  %s376_s11 = scalar_lea.hbm %s556_s3, 1024 }
  0x14   :  { %s34_s8 = sshll.u32 %s429_s7, 4  ;;  %p377_p8 = scmp.ne.s32.totalorder %s556_s3, %s376_s11  ;;  %s35_s8 = int_to_ptr.vmem [resolvable:$true] %s34_s8 }
  0x15   :  { %p380_p9 = scmp.lt.u32.totalorder %s376_s11, %s556_s3 }
  0x17   :  { %p382_p10 = pnand %p380_p9, %p377_p8 }
  0x19   :  { %385 = shalt.err (!%p382_p10)
}
  0x1a   :  { %s386_s16 = scalar_lea.vmem %s35_s8, 1024  ;;  %p391_p12 = scmp.lt.s32.totalorder %s35_s8, %s35_s8 }
  0x1b   :  { %p387_p11 = scmp.ne.s32.totalorder %s35_s8, %s386_s16  ;;  %p392_p13 = scmp.lt.s32.totalorder %s386_s16, %s386_s16 }
  0x1d   :  { %p393_p0 = por %p392_p13, %p391_p12 }
  0x1f   :  { %p394_p1 = pnand %p393_p0, %p387_p11 }
  0x21   :  { %397 = shalt.err (!%p394_p1)
}
  0x22   :  { %40 = dma.hbm_to_vmem [thread:$0]  %s556_s3, 1024, %s35_s8, [#allocation6], %s427_s28, %s427_s28, %s428_s29  }
  0x23   :  { %420 = dma.done.wait [#allocation3], 512  }
  0x24   :  { %421 = vsyncadd [#allocation3], 4294966784 }
  0x25   :  { %422 = dma.done.wait [#allocation6], 1024  }
  0x26   :  { %423 = vsyncadd [#allocation6], 4294966272  ;;  %vm56_vm0 = vcmask 523264   ;;  %v50_v0 = vld [vmem:[#allocation2] sm:$0xff]  ;;  %v52_v1 = vld [vmem:[#allocation2 + $0x10] sm:$0xff]  ;;  %v430_v36 = vmov 0  }
  0x27   :  { %v51_v2 = vld [vmem:[#allocation2 + $0x8] sm:$0xff]  ;;  %v57_v3 = vsel %vm56_vm0, %v50_v0, 0.0  ;;  %v63_v4 = vsel %vm56_vm0, %v52_v1, 0.0  ;;  %v53_v5 = vld [vmem:[#allocation2 + $0x18] sm:$0xff]  ;;  %230 = vmatprep.mubr.bf16.mxu0 %v430_v36  ;;  %240 = vmatprep.mubr.bf16.mxu1 %v430_v36  ;;  %v300_v51 = vld [vmem:[%s554_s1] ss:$0 sm:$0xff] }
  0x28   :  { %58 = vadd.xlane.f32.xlu0 %v57_v3  ;;  %64 = vadd.xlane.f32.xlu1 %v63_v4  ;;  %v60_v6 = vsel %vm56_vm0, %v51_v2, 0.0  ;;  %v66_v7 = vsel %vm56_vm0, %v53_v5, 0.0  ;;  %v334_v28 = vld [vmem:[#allocation5 + $0x4] ss:$8 sps:$4 sm:$0xff]   ;;  %v336_v29 = vld [vmem:[#allocation5] ss:$8 sps:$4 sm:$0xff]  }
  0x29   :  { %198 = vmatprep.subr.bf16.mxu0 %v334_v28  ;;  %320 = vmatprep.subr.bf16.mxu1 %v334_v28  ;;  %v337_v30 = vld [vmem:[#allocation5 + $0x14] ss:$8 sps:$4 sm:$0xff]   ;;  %v339_v31 = vld [vmem:[#allocation5 + $0x10] ss:$8 sps:$4 sm:$0xff]   ;;  %v340_v32 = vld [vmem:[#allocation5 + $0x24] ss:$8 sps:$4 sm:$0xff]  }
  0x2a   :  { %199 = vmatpush1.bf16.msra.mxu0 %v336_v29  ;;  %324 = vmatpush1.bf16.msra.mxu1 %v336_v29  ;;  %v342_v33 = vld [vmem:[#allocation5 + $0x20] ss:$8 sps:$4 sm:$0xff]   ;;  %v343_v34 = vld [vmem:[#allocation5 + $0x34] ss:$8 sps:$4 sm:$0xff]   ;;  %v345_v35 = vld [vmem:[#allocation5 + $0x30] ss:$8 sps:$4 sm:$0xff]  }
  0x2b   :  { %200 = vmatprep.subr.bf16.mxu0 %v337_v30  ;;  %321 = vmatprep.subr.bf16.mxu1 %v337_v30  ;;  %v301_v57 = vld [vmem:[%s555_s2] ss:$0 sm:$0xff]  ;;  %vm275_vm1 = vcmask 1043456   ;;  %vm276_vm2 = vcmask 523268  }
  0x2c   :  { %61 = vadd.xlane.f32.xlu0 %v60_v6  ;;  %67 = vadd.xlane.f32.xlu1 %v66_v7  ;;  %vm526_vm3 = vmor %vm276_vm2, %vm275_vm1 }
  0x2e   :  { %201 = vmatpush1.bf16.msra.mxu0 %v339_v31  ;;  %325 = vmatpush1.bf16.msra.mxu1 %v339_v31 }
  0x2f   :  { %202 = vmatprep.subr.bf16.mxu0 %v340_v32  ;;  %322 = vmatprep.subr.bf16.mxu1 %v340_v32 }
  0x32   :  { %203 = vmatpush1.bf16.msra.mxu0 %v342_v33  ;;  %326 = vmatpush1.bf16.msra.mxu1 %v342_v33 }
  0x33   :  { %204 = vmatprep.subr.bf16.mxu0 %v343_v34  ;;  %323 = vmatprep.subr.bf16.mxu1 %v343_v34 }
  0x36   :  { %205 = vmatpush1.bf16.msra.mxu0 %v345_v35  ;;  %327 = vmatpush1.bf16.msra.mxu1 %v345_v35 }
  0xb5   :  { %v59_v8 = vpop.xlane.xlu0 %58  ;;  %v65_v9 = vpop.xlane.xlu1 %64 }
  0xb6   :  { %v70_v10 = vmul.f32 0.015625, %v59_v8  ;;  %v72_v11 = vmul.f32 0.015625, %v65_v9  ;;  %v140_v8 = vld [vmem:[%s557_s4] sm:$0x3]  ;;  %s431_s4 = smov [#allocation7]  }
  0xb7   :  { %s287_s21 = sshll.u32 %s431_s4, 4  ;;  %s288_s21 = int_to_ptr.vmem [resolvable:$true] %s287_s21 }
  0xb8   :  { %v496_v12 = vsub.f32 %v50_v0, %v70_v10  ;;  %v498_v13 = vsub.f32 %v52_v1, %v72_v11  ;;  %s398_s22 = scalar_lea.vmem %s288_s21, 512  ;;  %p403_p3 = scmp.lt.s32.totalorder %s288_s21, %s288_s21 }
  0xb9   :  { %v62_v14 = vpop.xlane.xlu0 %61  ;;  %v68_v15 = vpop.xlane.xlu1 %67  ;;  %p399_p2 = scmp.ne.s32.totalorder %s288_s21, %s398_s22  ;;  %p404_p4 = scmp.lt.s32.totalorder %s398_s22, %s398_s22 }
  0xba   :  { %v71_v16 = vmul.f32 0.015625, %v62_v14  ;;  %v73_v17 = vmul.f32 0.015625, %v68_v15  ;;  %v78_v18 = vmul.f32 %v496_v12, %v496_v12  ;;  %v80_v19 = vmul.f32 %v498_v13, %v498_v13 }
  0xbb   :  { %p405_p5 = por %p404_p4, %p403_p3 }
  0xbc   :  { %v75_v20 = vsub.f32 %v51_v2, %v71_v16  ;;  %v504_v21 = vsub.f32 %v53_v5, %v73_v17  ;;  %v82_v22 = vsel %vm56_vm0, %v78_v18, 0.0  ;;  %v88_v23 = vsel %vm56_vm0, %v80_v19, 0.0 }
  0xbd   :  { %83 = vadd.xlane.f32.xlu0 %v82_v22  ;;  %v142_v5 = vlaneseq  ;;  %p406_p6 = pnand %p405_p5, %p399_p2 }
  0xbe   :  { %v79_v24 = vmul.f32 %v75_v20, %v75_v20  ;;  %v81_v25 = vmul.f32 %v504_v21, %v504_v21 }
  0xbf   :  { %v143_v6 = vshrl.u32 %v142_v5, 7 }
  0xc0   :  { %v85_v26 = vsel %vm56_vm0, %v79_v24, 0.0  ;;  %v91_v27 = vsel %vm56_vm0, %v81_v25, 0.0 }
  0xc1   :  { %89 = vadd.xlane.f32.xlu0 %v88_v23  ;;  %86 = vadd.xlane.f32.xlu1 %v85_v26  ;;  %v144_v7 = vsub.s32 0, %v143_v6  ;;  %v148_v9 = vsub.s32 1, %v143_v6 }
  0xc3   :  { %v145_v10 = vrot.slane %v140_v8, %v144_v7  ;;  %v149_v11 = vrot.slane %v140_v8, %v148_v9 }
  0xc5   :  { %92 = vadd.xlane.f32.xlu1 %v91_v27 }
 0x14a   :  { %v84_v37 = vpop.xlane.xlu0 %83 }
 0x14b   :  { %v94_v38 = vmul.f32 0.015625, %v84_v37 }
 0x14d   :  { %v98_v39 = vadd.f32 1e-05, %v94_v38 }
 0x14e   :  { %v87_v40 = vpop.xlane.xlu1 %86  ;;  %v90_v41 = vpop.xlane.xlu0 %89 }
 0x14f   :  { %346 = vrsqrt.f32 %v98_v39  ;;  %v95_v42 = vmul.f32 0.015625, %v87_v40  ;;  %v96_v43 = vmul.f32 0.015625, %v90_v41 }
 0x151   :  { %v99_v44 = vadd.f32 1e-05, %v95_v42  ;;  %v100_v45 = vadd.f32 1e-05, %v96_v43 }
 0x152   :  { %v93_v46 = vpop.xlane.xlu1 %92 }
 0x153   :  { %348 = vrsqrt.f32 %v99_v44  ;;  %v97_v47 = vmul.f32 0.015625, %v93_v46 }
 0x154   :  { %350 = vrsqrt.f32 %v100_v45 }
 0x155   :  { %v101_v48 = vadd.f32 1e-05, %v97_v47 }
 0x157   :  { %352 = vrsqrt.f32 %v101_v48 }
 0x159   :  { %v347_v49 = vpop.eup %346 }
 0x15a   :  { %v106_v50 = vmul.f32 %v347_v49, %v496_v12 }
 0x15c   :  { %v116_v55 = vmul.f32 %v300_v51, %v106_v50 }
 0x15d   :  { %v349_v52 = vpop.eup %348 }
 0x15e   :  { %v351_v53 = vpop.eup %350  ;;  %v107_v54 = vmul.f32 %v349_v52, %v75_v20  ;;  %v126_v61 = vadd.f32 %v301_v57, %v116_v55 }
 0x15f   :  { %v108_v56 = vmul.f32 %v351_v53, %v498_v13 }
 0x160   :  { %v117_v58 = vmul.f32 %v300_v51, %v107_v54 }
 0x161   :  { %v353_v59 = vpop.eup %352  ;;  %v118_v63 = vmul.f32 %v300_v51, %v108_v56 }
 0x162   :  { %v109_v60 = vmul.f32 %v353_v59, %v504_v21  ;;  %v127_v62 = vadd.f32 %v301_v57, %v117_v58 }
 0x163   :  { %v128_v2 = vadd.f32 %v301_v57, %v118_v63 }
 0x164   :  { %v130_v0 = vpack.c.bf16 %v127_v62, %v126_v61  ;;  %v119_v1 = vmul.f32 %v300_v51, %v109_v60 }
 0x166   :  { %310 = vmatmul.mubr.msk.bf16.vlgmr.msra.gmra.mrb[0].mxu0 %vm56_vm0, %v130_v0  ;;  %v129_v3 = vadd.f32 %v301_v57, %v119_v1 }
 0x168   :  { %v131_v4 = vpack.c.bf16 %v129_v3, %v128_v2 }
 0x16a   :  { %311 = vmatmul.mubr.msk.bf16.vlgmr.msra.gmra.mrb[0].mxu1 %vm56_vm0, %v131_v4 }
 0x239   :  { %v232_v12 = vpop.f32.mrb[0].mxu0 }
 0x23a   :  { %v233_v13 = vadd.f32 %v232_v12, %v145_v10  ;;  %v234_v14 = vpop.f32.mrb[1].mxu0 }
 0x23b   :  { %v235_v15 = vadd.f32 %v234_v14, %v149_v11  ;;  %v236_v16 = vpop.f32.mrb[2].mxu0 }
 0x23c   :  { %v237_v18 = vadd.f32 %v236_v16, %v145_v10  ;;  %v238_v19 = vpop.f32.mrb[3].mxu0 }
 0x23d   :  { %v316_v20 = vpack.c.bf16 %v235_v15, %v233_v13  ;;  %v239_v21 = vadd.f32 %v238_v19, %v149_v11  ;;  %v242_v22 = vpop.f32.mrb[0].mxu1 }
 0x23e   :  { %v243_v23 = vadd.f32 %v242_v22, %v145_v10  ;;  %v244_v24 = vpop.f32.mrb[1].mxu1 }
 0x23f   :  { %278 = vst.msk [vmem:[#allocation7] sm:$0xff] %vm526_vm3, %v316_v20  ;;  %v317_v25 = vpack.c.bf16 %v239_v21, %v237_v18  ;;  %v245_v26 = vadd.f32 %v244_v24, %v149_v11  ;;  %v246_v27 = vpop.f32.mrb[2].mxu1 }
 0x240   :  { %v247_v28 = vadd.f32 %v246_v27, %v145_v10  ;;  %v248_v29 = vpop.f32.mrb[3].mxu1 }
 0x241   :  { %279 = vst.msk [vmem:[#allocation7 + $0x8] sm:$0xff] %vm526_vm3, %v317_v25  ;;  %v318_v30 = vpack.c.bf16 %v245_v26, %v243_v23  ;;  %v249_v31 = vadd.f32 %v248_v29, %v149_v11 }
 0x243   :  { %280 = vst.msk [vmem:[#allocation7 + $0x10] sm:$0xff] %vm526_vm3, %v318_v30  ;;  %v319_v32 = vpack.c.bf16 %v249_v31, %v247_v28 }
 0x245   :  { %281 = vst.msk [vmem:[#allocation7 + $0x18] sm:$0xff] %vm526_vm3, %v319_v32 }
 0x246   :  { %409 = shalt.err (!%p406_p6)
}
 0x247   :  { %s410_s25 = scalar_lea.hbm %s558_s5, 512 }
 0x248   :  { %p411_p7 = scmp.ne.s32.totalorder %s558_s5, %s410_s25  ;;  %p414_p8 = scmp.lt.u32.totalorder %s410_s25, %s558_s5 }
 0x24a   :  { %p416_p9 = pnand %p414_p8, %p411_p7 }
 0x24c   :  { %419 = shalt.err (!%p416_p9)
}
 0x24d   :  { %293 = dma.vmem_to_hbm [thread:$0]  %s288_s21, 512, %s558_s5, [#allocation4], %s427_s28, %s427_s28, %s428_s29  }
 0x24e   :  { %424 = dma.done.wait [#allocation4], 512  }
 0x24f   :  { %425 = vsyncadd [#allocation4], 4294966784 }
 0x250   :  { %297 = vsyncpa [#allocation3], 1 }
 0x251   :  { %298 = vsyncpa [#allocation6], 1 }
 0x252   :  { %299 = vsyncpa [#allocation4], 1 }

// kernel: tpu_custom_call.1
= control target key start
LH: loop header
LB: loop body
LE: loop exit
PB: predicated region body
PF: predicated region fallthrough
CT: control target
= control target key end

     0   :  { %10 = vsyncpa [#allocation3], 0  ;;  %s553_s0 = inlined_call_operand.hbm [shape: f32[32,64], index: 0, kind: input, shape index: {}]   ;;  %s554_s1 = inlined_call_operand.vmem [shape: f32[1,64], index: 1, kind: input, shape index: {}]   ;;  %s555_s2 = inlined_call_operand.vmem [shape: f32[1,64], index: 2, kind: input, shape index: {}]   ;;  %s556_s3 = inlined_call_operand.hbm [shape: bf16[64,192], index: 3, kind: input, shape index: {}]   ;;  %s557_s4 = inlined_call_operand.vmem [shape: f32[1,192], index: 4, kind: input, shape index: {}]   ;;  %s558_s5 = inlined_call_operand.hbm [shape: bf16[32,192], index: 5, kind: output, shape index: {}]  }
   0x1   :  { %11 = vsyncpa [#allocation6], 0 }
   0x2   :  { %12 = vsyncpa [#allocation4], 0  ;;  %s426_s18 = smov [#allocation2]   ;;  %s354_s22 = scalar_lea.hbm %s553_s0, 512 }
   0x3   :  { %s18_s19 = sshll.u32 %s426_s18, 4  ;;  %p355_p0 = scmp.ne.s32.totalorder %s553_s0, %s354_s22  ;;  %s19_s19 = int_to_ptr.vmem [resolvable:$true] %s18_s19 }
   0x4   :  { %p358_p1 = scmp.lt.u32.totalorder %s354_s22, %s553_s0 }
   0x6   :  { %p360_p2 = pnand %p358_p1, %p355_p0 }
   0x8   :  { %363 = shalt.err (!%p360_p2)
}
   0x9   :  { %s364_s27 = scalar_lea.vmem %s19_s19, 512  ;;  %p369_p4 = scmp.lt.s32.totalorder %s19_s19, %s19_s19 }
   0xa   :  { %p365_p3 = scmp.ne.s32.totalorder %s19_s19, %s364_s27  ;;  %p370_p5 = scmp.lt.s32.totalorder %s364_s27, %s364_s27 }
   0xc   :  { %p371_p6 = por %p370_p5, %p369_p4 }
   0xe   :  { %p372_p7 = pnand %p371_p6, %p365_p3 }
  0x10   :  { %375 = shalt.err (!%p372_p7)
}
  0x11   :  { %s427_s28 = smov 128   ;;  %s428_s29 = smov 8  }
  0x12   :  { %24 = dma.hbm_to_vmem [thread:$0]  %s553_s0, 512, %s19_s19, [#allocation3], %s427_s28, %s427_s28, %s428_s29  }
  0x13   :  { %s429_s7 = smov [#allocation5]   ;;  %s376_s11 = scalar_lea.hbm %s556_s3, 1024 }
  0x14   :  { %s34_s8 = sshll.u32 %s429_s7, 4  ;;  %p377_p8 = scmp.ne.s32.totalorder %s556_s3, %s376_s11  ;;  %s35_s8 = int_to_ptr.vmem [resolvable:$true] %s34_s8 }
  0x15   :  { %p380_p9 = scmp.lt.u32.totalorder %s376_s11, %s556_s3 }
  0x17   :  { %p382_p10 = pnand %p380_p9, %p377_p8 }
  0x19   :  { %385 = shalt.err (!%p382_p10)
}
  0x1a   :  { %s386_s16 = scalar_lea.vmem %s35_s8, 1024  ;;  %p391_p12 = scmp.lt.s32.totalorder %s35_s8, %s35_s8 }
  0x1b   :  { %p387_p11 = scmp.ne.s32.totalorder %s35_s8, %s386_s16  ;;  %p392_p13 = scmp.lt.s32.totalorder %s386_s16, %s386_s16 }
  0x1d   :  { %p393_p0 = por %p392_p13, %p391_p12 }
  0x1f   :  { %p394_p1 = pnand %p393_p0, %p387_p11 }
  0x21   :  { %397 = shalt.err (!%p394_p1)
}
  0x22   :  { %40 = dma.hbm_to_vmem [thread:$0]  %s556_s3, 1024, %s35_s8, [#allocation6], %s427_s28, %s427_s28, %s428_s29  }
  0x23   :  { %420 = dma.done.wait [#allocation3], 512  }
  0x24   :  { %421 = vsyncadd [#allocation3], 4294966784 }
  0x25   :  { %422 = dma.done.wait [#allocation6], 1024  }
  0x26   :  { %423 = vsyncadd [#allocation6], 4294966272  ;;  %vm56_vm0 = vcmask 523264   ;;  %v50_v0 = vld [vmem:[#allocation2] sm:$0xff]  ;;  %v52_v1 = vld [vmem:[#allocation2 + $0x10] sm:$0xff]  ;;  %v430_v36 = vmov 0  }
  0x27   :  { %v51_v2 = vld [vmem:[#allocation2 + $0x8] sm:$0xff]  ;;  %v57_v3 = vsel %vm56_vm0, %v50_v0, 0.0  ;;  %v63_v4 = vsel %vm56_vm0, %v52_v1, 0.0  ;;  %v53_v5 = vld [vmem:[#allocation2 + $0x18] sm:$0xff]  ;;  %230 = vmatprep.mubr.bf16.mxu0 %v430_v36  ;;  %240 = vmatprep.mubr.bf16.mxu1 %v430_v36  ;;  %v300_v51 = vld [vmem:[%s554_s1] ss:$0 sm:$0xff] }
  0x28   :  { %58 = vadd.xlane.f32.xlu0 %v57_v3  ;;  %64 = vadd.xlane.f32.xlu1 %v63_v4  ;;  %v60_v6 = vsel %vm56_vm0, %v51_v2, 0.0  ;;  %v66_v7 = vsel %vm56_vm0, %v53_v5, 0.0  ;;  %v334_v28 = vld [vmem:[#allocation5 + $0x4] ss:$8 sps:$4 sm:$0xff]   ;;  %v336_v29 = vld [vmem:[#allocation5] ss:$8 sps:$4 sm:$0xff]  }
  0x29   :  { %198 = vmatprep.subr.bf16.mxu0 %v334_v28  ;;  %320 = vmatprep.subr.bf16.mxu1 %v334_v28  ;;  %v337_v30 = vld [vmem:[#allocation5 + $0x14] ss:$8 sps:$4 sm:$0xff]   ;;  %v339_v31 = vld [vmem:[#allocation5 + $0x10] ss:$8 sps:$4 sm:$0xff]   ;;  %v340_v32 = vld [vmem:[#allocation5 + $0x24] ss:$8 sps:$4 sm:$0xff]  }
  0x2a   :  { %199 = vmatpush1.bf16.msra.mxu0 %v336_v29  ;;  %324 = vmatpush1.bf16.msra.mxu1 %v336_v29  ;;  %v342_v33 = vld [vmem:[#allocation5 + $0x20] ss:$8 sps:$4 sm:$0xff]   ;;  %v343_v34 = vld [vmem:[#allocation5 + $0x34] ss:$8 sps:$4 sm:$0xff]   ;;  %v345_v35 = vld [vmem:[#allocation5 + $0x30] ss:$8 sps:$4 sm:$0xff]  }
  0x2b   :  { %200 = vmatprep.subr.bf16.mxu0 %v337_v30  ;;  %321 = vmatprep.subr.bf16.mxu1 %v337_v30  ;;  %v301_v57 = vld [vmem:[%s555_s2] ss:$0 sm:$0xff]  ;;  %vm275_vm1 = vcmask 1043456   ;;  %vm276_vm2 = vcmask 523268  }
  0x2c   :  { %61 = vadd.xlane.f32.xlu0 %v60_v6  ;;  %67 = vadd.xlane.f32.xlu1 %v66_v7  ;;  %vm526_vm3 = vmor %vm276_vm2, %vm275_vm1 }
  0x2e   :  { %201 = vmatpush1.bf16.msra.mxu0 %v339_v31  ;;  %325 = vmatpush1.bf16.msra.mxu1 %v339_v31 }
  0x2f   :  { %202 = vmatprep.subr.bf16.mxu0 %v340_v32  ;;  %322 = vmatprep.subr.bf16.mxu1 %v340_v32 }
  0x32   :  { %203 = vmatpush1.bf16.msra.mxu0 %v342_v33  ;;  %326 = vmatpush1.bf16.msra.mxu1 %v342_v33 }
  0x33   :  { %204 = vmatprep.subr.bf16.mxu0 %v343_v34  ;;  %323 = vmatprep.subr.bf16.mxu1 %v343_v34 }
  0x36   :  { %205 = vmatpush1.bf16.msra.mxu0 %v345_v35  ;;  %327 = vmatpush1.bf16.msra.mxu1 %v345_v35 }
  0xb5   :  { %v59_v8 = vpop.xlane.xlu0 %58  ;;  %v65_v9 = vpop.xlane.xlu1 %64 }
  0xb6   :  { %v70_v10 = vmul.f32 0.015625, %v59_v8  ;;  %v72_v11 = vmul.f32 0.015625, %v65_v9  ;;  %v140_v8 = vld [vmem:[%s557_s4] sm:$0x3]  ;;  %s431_s4 = smov [#allocation7]  }
  0xb7   :  { %s287_s21 = sshll.u32 %s431_s4, 4  ;;  %s288_s21 = int_to_ptr.vmem [resolvable:$true] %s287_s21 }
  0xb8   :  { %v496_v12 = vsub.f32 %v50_v0, %v70_v10  ;;  %v498_v13 = vsub.f32 %v52_v1, %v72_v11  ;;  %s398_s22 = scalar_lea.vmem %s288_s21, 512  ;;  %p403_p3 = scmp.lt.s32.totalorder %s288_s21, %s288_s21 }
  0xb9   :  { %v62_v14 = vpop.xlane.xlu0 %61  ;;  %v68_v15 = vpop.xlane.xlu1 %67  ;;  %p399_p2 = scmp.ne.s32.totalorder %s288_s21, %s398_s22  ;;  %p404_p4 = scmp.lt.s32.totalorder %s398_s22, %s398_s22 }
  0xba   :  { %v71_v16 = vmul.f32 0.015625, %v62_v14  ;;  %v73_v17 = vmul.f32 0.015625, %v68_v15  ;;  %v78_v18 = vmul.f32 %v496_v12, %v496_v12  ;;  %v80_v19 = vmul.f32 %v498_v13, %v498_v13 }
  0xbb   :  { %p405_p5 = por %p404_p4, %p403_p3 }
  0xbc   :  { %v75_v20 = vsub.f32 %v51_v2, %v71_v16  ;;  %v504_v21 = vsub.f32 %v53_v5, %v73_v17  ;;  %v82_v22 = vsel %vm56_vm0, %v78_v18, 0.0  ;;  %v88_v23 = vsel %vm56_vm0, %v80_v19, 0.0 }
  0xbd   :  { %83 = vadd.xlane.f32.xlu0 %v82_v22  ;;  %v142_v5 = vlaneseq  ;;  %p406_p6 = pnand %p405_p5, %p399_p2 }
  0xbe   :  { %v79_v24 = vmul.f32 %v75_v20, %v75_v20  ;;  %v81_v25 = vmul.f32 %v504_v21, %v504_v21 }
  0xbf   :  { %v143_v6 = vshrl.u32 %v142_v5, 7 }
  0xc0   :  { %v85_v26 = vsel %vm56_vm0, %v79_v24, 0.0  ;;  %v91_v27 = vsel %vm56_vm0, %v81_v25, 0.0 }
  0xc1   :  { %89 = vadd.xlane.f32.xlu0 %v88_v23  ;;  %86 = vadd.xlane.f32.xlu1 %v85_v26  ;;  %v144_v7 = vsub.s32 0, %v143_v6  ;;  %v148_v9 = vsub.s32 1, %v143_v6 }
  0xc3   :  { %v145_v10 = vrot.slane %v140_v8, %v144_v7  ;;  %v149_v11 = vrot.slane %v140_v8, %v148_v9 }
  0xc5   :  { %92 = vadd.xlane.f32.xlu1 %v91_v27 }
 0x14a   :  { %v84_v37 = vpop.xlane.xlu0 %83 }
 0x14b   :  { %v94_v38 = vmul.f32 0.015625, %v84_v37 }
 0x14d   :  { %v98_v39 = vadd.f32 1e-05, %v94_v38 }
 0x14e   :  { %v87_v40 = vpop.xlane.xlu1 %86  ;;  %v90_v41 = vpop.xlane.xlu0 %89 }
 0x14f   :  { %346 = vrsqrt.f32 %v98_v39  ;;  %v95_v42 = vmul.f32 0.015625, %v87_v40  ;;  %v96_v43 = vmul.f32 0.015625, %v90_v41 }
 0x151   :  { %v99_v44 = vadd.f32 1e-05, %v95_v42  ;;  %v100_v45 = vadd.f32 1e-05, %v96_v43 }
 0x152   :  { %v93_v46 = vpop.xlane.xlu1 %92 }
 0x153   :  { %348 = vrsqrt.f32 %v99_v44  ;;  %v97_v47 = vmul.f32 0.015625, %v93_v46 }
 0x154   :  { %350 = vrsqrt.f32 %v100_v45 }
 0x155   :  { %v101_v48 = vadd.f32 1e-05, %v97_v47 }
 0x157   :  { %352 = vrsqrt.f32 %v101_v48 }
 0x159   :  { %v347_v49 = vpop.eup %346 }
 0x15a   :  { %v106_v50 = vmul.f32 %v347_v49, %v496_v12 }
 0x15c   :  { %v116_v55 = vmul.f32 %v300_v51, %v106_v50 }
 0x15d   :  { %v349_v52 = vpop.eup %348 }
 0x15e   :  { %v351_v53 = vpop.eup %350  ;;  %v107_v54 = vmul.f32 %v349_v52, %v75_v20  ;;  %v126_v61 = vadd.f32 %v301_v57, %v116_v55 }
 0x15f   :  { %v108_v56 = vmul.f32 %v351_v53, %v498_v13 }
 0x160   :  { %v117_v58 = vmul.f32 %v300_v51, %v107_v54 }
 0x161   :  { %v353_v59 = vpop.eup %352  ;;  %v118_v63 = vmul.f32 %v300_v51, %v108_v56 }
 0x162   :  { %v109_v60 = vmul.f32 %v353_v59, %v504_v21  ;;  %v127_v62 = vadd.f32 %v301_v57, %v117_v58 }
 0x163   :  { %v128_v2 = vadd.f32 %v301_v57, %v118_v63 }
 0x164   :  { %v130_v0 = vpack.c.bf16 %v127_v62, %v126_v61  ;;  %v119_v1 = vmul.f32 %v300_v51, %v109_v60 }
 0x166   :  { %310 = vmatmul.mubr.msk.bf16.vlgmr.msra.gmra.mrb[0].mxu0 %vm56_vm0, %v130_v0  ;;  %v129_v3 = vadd.f32 %v301_v57, %v119_v1 }
 0x168   :  { %v131_v4 = vpack.c.bf16 %v129_v3, %v128_v2 }
 0x16a   :  { %311 = vmatmul.mubr.msk.bf16.vlgmr.msra.gmra.mrb[0].mxu1 %vm56_vm0, %v131_v4 }
 0x239   :  { %v232_v12 = vpop.f32.mrb[0].mxu0 }
 0x23a   :  { %v233_v13 = vadd.f32 %v232_v12, %v145_v10  ;;  %v234_v14 = vpop.f32.mrb[1].mxu0 }
 0x23b   :  { %v235_v15 = vadd.f32 %v234_v14, %v149_v11  ;;  %v236_v16 = vpop.f32.mrb[2].mxu0 }
 0x23c   :  { %v237_v18 = vadd.f32 %v236_v16, %v145_v10  ;;  %v238_v19 = vpop.f32.mrb[3].mxu0 }
 0x23d   :  { %v316_v20 = vpack.c.bf16 %v235_v15, %v233_v13  ;;  %v239_v21 = vadd.f32 %v238_v19, %v149_v11  ;;  %v242_v22 = vpop.f32.mrb[0].mxu1 }
 0x23e   :  { %v243_v23 = vadd.f32 %v242_v22, %v145_v10  ;;  %v244_v24 = vpop.f32.mrb[1].mxu1 }
 0x23f   :  { %278 = vst.msk [vmem:[#allocation7] sm:$0xff] %vm526_vm3, %v316_v20  ;;  %v317_v25 = vpack.c.bf16 %v239_v21, %v237_v18  ;;  %v245_v26 = vadd.f32 %v244_v24, %v149_v11  ;;  %v246_v27 = vpop.f32.mrb[2].mxu1 }
 0x240   :  { %v247_v28 = vadd.f32 %v246_v27, %v145_v10  ;;  %v248_v29 = vpop.f32.mrb[3].mxu1 }
 0x241   :  { %279 = vst.msk [vmem:[#allocation7 + $0x8] sm:$0xff] %vm526_vm3, %v317_v25  ;;  %v318_v30 = vpack.c.bf16 %v245_v26, %v243_v23  ;;  %v249_v31 = vadd.f32 %v248_v29, %v149_v11 }
 0x243   :  { %280 = vst.msk [vmem:[#allocation7 + $0x10] sm:$0xff] %vm526_vm3, %v318_v30  ;;  %v319_v32 = vpack.c.bf16 %v249_v31, %v247_v28 }
 0x245   :  { %281 = vst.msk [vmem:[#allocation7 + $0x18] sm:$0xff] %vm526_vm3, %v319_v32 }
 0x246   :  { %409 = shalt.err (!%p406_p6)
}
 0x247   :  { %s410_s25 = scalar_lea.hbm %s558_s5, 512 }
 0x248   :  { %p411_p7 = scmp.ne.s32.totalorder %s558_s5, %s410_s25  ;;  %p414_p8 = scmp.lt.u32.totalorder %s410_s25, %s558_s5 }
 0x24a   :  { %p416_p9 = pnand %p414_p8, %p411_p7 }
 0x24c   :  { %419 = shalt.err (!%p416_p9)
}
 0x24d   :  { %293 = dma.vmem_to_hbm [thread:$0]  %s288_s21, 512, %s558_s5, [#allocation4], %s427_s28, %s427_s28, %s428_s29  }
 0x24e   :  { %424 = dma.done.wait [#allocation4], 512  }
 0x24f   :  { %425 = vsyncadd [#allocation4], 4294966784 }
 0x250   :  { %297 = vsyncpa [#allocation3], 1 }
 0x251   :  { %298 = vsyncpa [#allocation6], 1 }
 0x252   :  { %299 = vsyncpa [#allocation4], 1 }

</bundles_post_ra>
